<compile_context>
chip_gen: v6e
topology: v6e:2x2x1
jax: 0.10.0
libtpu: 0.0.40
codegen_flags: <defaults>
</compile_context>

<pallas_src>
import functools

import jax
import jax.numpy as jnp
from jax.experimental import pallas as pl
from jax.experimental.pallas import tpu as pltpu

_INV_SQRT2 = 0.7071067811865476   # 1/sqrt(2), hoisted scalar constant
_D_IN, _D_HID, _D_OUT = 12, 8, 10
_SLAB_W = 128                     # lane-dense packed-output width (>= 128)


def _round_up(n: int, m: int) -> int:
    return ((n + m - 1) // m) * m


def _gelu_exact(x):
    # nn.GELU() default = exact erf-based GELU.
    return 0.5 * x * (1.0 + jax.lax.erf(x * _INV_SQRT2))


def _mlp_gelu_kernel(x_ref, w1_ref, b1_ref, w2_ref, b2_ref, slab_ref):
    x = x_ref[...]                                              # [TB, 12]
    # mlp_1: Linear(12 -> 8)
    out1 = jnp.dot(x, w1_ref[...],
                   preferred_element_type=jnp.float32) + b1_ref[...]
    # gelu (exact, erf-based)
    out2 = _gelu_exact(out1)
    # mlp_3: Linear(8 -> 10)
    out3 = jnp.dot(out2, w2_ref[...],
                   preferred_element_type=jnp.float32) + b2_ref[...]
    # Pack the three narrow results into one lane-dense [TB, 128] slab so the
    # store is a single unmasked full-lane vst and the HBM writeback is one
    # contiguous block per tile.
    tb = out1.shape[0]
    pad = jnp.zeros((tb, _SLAB_W - (_D_HID + _D_HID + _D_OUT)), jnp.float32)
    slab_ref[...] = jnp.concatenate([out1, out2, out3, pad], axis=-1)


@functools.partial(jax.jit, static_argnames=("block_b",))
def test_model_forward(x, w1_t, b1, w2_t, b2, *, block_b: int = 512):
    """TestModel forward pass as a single batch-tiled Pallas kernel.

    Args:
        x:    [B, 12] float32 input.
        w1_t: [12, 8] float32 (transpose of PyTorch mlp_1.weight).
        b1:   [1, 8]  float32.
        w2_t: [8, 10] float32 (transpose of PyTorch mlp_3.weight).
        b2:   [1, 10] float32.
        block_b: batch rows per grid step (rounded up to a multiple of 8).

    Returns:
        (out_1 [B, 8], out_2 [B, 8], out_3 [B, 10])
    """
    B = x.shape[0]
    # Rows per grid step: multiple of 8 (sublane), capped at the batch size.
    TB = _round_up(min(block_b, B), 8)
    B_pad = _round_up(B, TB)
    if B_pad != B:
        x = jnp.pad(x, ((0, B_pad - B), (0, 0)))

    slab = pl.pallas_call(
        _mlp_gelu_kernel,
        out_shape=jax.ShapeDtypeStruct((B_pad, _SLAB_W), jnp.float32),
        grid=(B_pad // TB,),
        in_specs=[
            pl.BlockSpec((TB, _D_IN), lambda i: (i, 0)),        # x: tiled over batch
            pl.BlockSpec((_D_IN, _D_HID), lambda i: (0, 0)),    # w1_t: VMEM-resident
            pl.BlockSpec((1, _D_HID), lambda i: (0, 0)),        # b1:   VMEM-resident
            pl.BlockSpec((_D_HID, _D_OUT), lambda i: (0, 0)),   # w2_t: VMEM-resident
            pl.BlockSpec((1, _D_OUT), lambda i: (0, 0)),        # b2:   VMEM-resident
        ],
        out_specs=pl.BlockSpec((TB, _SLAB_W), lambda i: (i, 0)),
        compiler_params=pltpu.CompilerParams(
            dimension_semantics=("parallel",),   # megacore sharding on v7x
        ),
    )(x, w1_t, b1, w2_t, b2)

    # Split the lane-dense slab back into the module's three outputs.
    out_1 = slab[:B, 0:_D_HID]
    out_2 = slab[:B, _D_HID:2 * _D_HID]
    out_3 = slab[:B, 2 * _D_HID:2 * _D_HID + _D_OUT]
    return out_1, out_2, out_3


def init_params(key):
    """Deterministic PyTorch-style Linear init (uniform +/- 1/sqrt(fan_in))."""
    k1, k2, k3, k4 = jax.random.split(key, 4)
    bound1 = 1.0 / jnp.sqrt(12.0)
    bound2 = 1.0 / jnp.sqrt(8.0)
    # stored pre-transposed: [in, out]
    w1_t = jax.random.uniform(k1, (_D_IN, _D_HID), jnp.float32, -bound1, bound1)
    b1 = jax.random.uniform(k2, (1, _D_HID), jnp.float32, -bound1, bound1)
    w2_t = jax.random.uniform(k3, (_D_HID, _D_OUT), jnp.float32, -bound2, bound2)
    b2 = jax.random.uniform(k4, (1, _D_OUT), jnp.float32, -bound2, bound2)
    return w1_t, b1, w2_t, b2


if __name__ == "__main__":
    key = jax.random.PRNGKey(0)
    k_x, k_p = jax.random.split(key)

    # Small demo batch; block_b=32 exercises the multi-step batch grid and the
    # padding path (100 rows -> 128 padded, 4 grid steps).  In production use
    # the default block_b=512 so each step is a full-size MXU tile.
    B = 100
    x = jax.random.normal(k_x, (B, _D_IN), jnp.float32)
    w1_t, b1, w2_t, b2 = init_params(k_p)

    out_1, out_2, out_3 = test_model_forward(x, w1_t, b1, w2_t, b2, block_b=32)
    jax.block_until_ready((out_1, out_2, out_3))

    # Reference check in plain JAX.
    ref1 = x @ w1_t + b1
    ref2 = 0.5 * ref1 * (1.0 + jax.lax.erf(ref1 * _INV_SQRT2))
    ref3 = ref2 @ w2_t + b2
    assert out_1.shape == (B, _D_HID)
    assert out_2.shape == (B, _D_HID)
    assert out_3.shape == (B, _D_OUT)
    assert jnp.allclose(out_1, ref1, atol=1e-4)
    assert jnp.allclose(out_2, ref2, atol=1e-4)
    assert jnp.allclose(out_3, ref3, atol=1e-4)

    print("KERNEL_OK")
</pallas_src>

<mosaic_0001>
module attributes {stable_mosaic.version = 11 : i64} {
  func.func @_mlp_gelu_kernel(%arg0: i32, %arg1: memref<32x12xf32, #tpu.memory_space<vmem>>, %arg2: memref<12x8xf32, #tpu.memory_space<vmem>>, %arg3: memref<1x8xf32, #tpu.memory_space<vmem>>, %arg4: memref<8x10xf32, #tpu.memory_space<vmem>>, %arg5: memref<1x10xf32, #tpu.memory_space<vmem>>, %arg6: memref<32x128xf32, #tpu.memory_space<vmem>>) attributes {dimension_semantics = [#tpu.dimension_semantics<parallel>], iteration_bounds = array<i64: 4>, scalar_prefetch = 0 : i64, scratch_operands = 0 : i64, tpu.core_type = #tpu.core_type<tc>, window_params = [{transform_indices = @transform_0, window_bounds = array<i64: 32, 12>}, {pipeline_mode = #tpu.pipeline_mode<synchronous>, transform_indices = @transform_1, window_bounds = array<i64: 12, 8>}, {pipeline_mode = #tpu.pipeline_mode<synchronous>, transform_indices = @transform_2, window_bounds = array<i64: 1, 8>}, {pipeline_mode = #tpu.pipeline_mode<synchronous>, transform_indices = @transform_3, window_bounds = array<i64: 8, 10>}, {pipeline_mode = #tpu.pipeline_mode<synchronous>, transform_indices = @transform_4, window_bounds = array<i64: 1, 10>}, {transform_indices = @transform_5, window_bounds = array<i64: 32, 128>}]} {
    %c0 = arith.constant 0 : index
    %c0_0 = arith.constant 0 : index
    %0 = vector.load %arg1[%c0, %c0_0] : memref<32x12xf32, #tpu.memory_space<vmem>>, vector<32x12xf32>
    %c0_1 = arith.constant 0 : index
    %c0_2 = arith.constant 0 : index
    %1 = vector.load %arg2[%c0_1, %c0_2] : memref<12x8xf32, #tpu.memory_space<vmem>>, vector<12x8xf32>
    %cst = arith.constant dense<0.000000e+00> : vector<32x8xf32>
    %2 = tpu.matmul %0, %1, %cst {dimension_numbers = #tpu.dot_dimension_numbers<[1], [0], [0], [1], [0, 0, 1, 1], [], []>} : vector<32x12xf32>, vector<12x8xf32>, vector<32x8xf32> -> vector<32x8xf32>
    %c0_3 = arith.constant 0 : index
    %c0_4 = arith.constant 0 : index
    %3 = vector.load %arg3[%c0_3, %c0_4] : memref<1x8xf32, #tpu.memory_space<vmem>>, vector<1x8xf32>
    %4 = vector.broadcast %3 : vector<1x8xf32> to vector<32x8xf32>
    %5 = arith.addf %2, %4 : vector<32x8xf32>
    %cst_5 = arith.constant 5.000000e-01 : f32
    %6 = vector.broadcast %cst_5 : f32 to vector<32x8xf32>
    %7 = arith.mulf %6, %5 : vector<32x8xf32>
    %cst_6 = arith.constant 0.707106769 : f32
    %8 = vector.broadcast %cst_6 : f32 to vector<32x8xf32>
    %9 = arith.mulf %5, %8 : vector<32x8xf32>
    %10 = math.erf %9 : vector<32x8xf32>
    %cst_7 = arith.constant 1.000000e+00 : f32
    %11 = vector.broadcast %cst_7 : f32 to vector<32x8xf32>
    %12 = arith.addf %11, %10 : vector<32x8xf32>
    %13 = arith.mulf %7, %12 : vector<32x8xf32>
    %c0_8 = arith.constant 0 : index
    %c0_9 = arith.constant 0 : index
    %14 = vector.load %arg4[%c0_8, %c0_9] : memref<8x10xf32, #tpu.memory_space<vmem>>, vector<8x10xf32>
    %cst_10 = arith.constant dense<0.000000e+00> : vector<32x10xf32>
    %15 = tpu.matmul %13, %14, %cst_10 {dimension_numbers = #tpu.dot_dimension_numbers<[1], [0], [0], [1], [0, 0, 1, 1], [], []>} : vector<32x8xf32>, vector<8x10xf32>, vector<32x10xf32> -> vector<32x10xf32>
    %c0_11 = arith.constant 0 : index
    %c0_12 = arith.constant 0 : index
    %16 = vector.load %arg5[%c0_11, %c0_12] : memref<1x10xf32, #tpu.memory_space<vmem>>, vector<1x10xf32>
    %17 = vector.broadcast %16 : vector<1x10xf32> to vector<32x10xf32>
    %18 = arith.addf %15, %17 : vector<32x10xf32>
    %cst_13 = arith.constant 0.000000e+00 : f32
    %19 = vector.broadcast %cst_13 : f32 to vector<32x102xf32>
    %20 = tpu.concatenate %5, %13, %18, %19 in 1 : vector<32x8xf32>, vector<32x8xf32>, vector<32x10xf32>, vector<32x102xf32> -> vector<32x128xf32>
    %c0_14 = arith.constant 0 : index
    %c0_15 = arith.constant 0 : index
    %21 = vector.load %arg6[%c0_14, %c0_15] : memref<32x128xf32, #tpu.memory_space<vmem>>, vector<32x128xf32>
    tpu.vector_store %arg6[%c0_14, %c0_15], %20 {strides = array<i32>} : memref<32x128xf32, #tpu.memory_space<vmem>>, vector<32x128xf32>,
    return
  }
  func.func @transform_0(%arg0: i32) -> (i32, i32) {
    %c0_i32 = arith.constant 0 : i32
    %c0_i32_0 = arith.constant 0 : i32
    return %arg0, %c0_i32 : i32, i32
  }
  func.func @transform_1(%arg0: i32) -> (i32, i32) {
    %c0_i32 = arith.constant 0 : i32
    %c0_i32_0 = arith.constant 0 : i32
    %c0_i32_1 = arith.constant 0 : i32
    return %c0_i32, %c0_i32_0 : i32, i32
  }
  func.func @transform_2(%arg0: i32) -> (i32, i32) {
    %c0_i32 = arith.constant 0 : i32
    %c0_i32_0 = arith.constant 0 : i32
    %c0_i32_1 = arith.constant 0 : i32
    return %c0_i32, %c0_i32_0 : i32, i32
  }
  func.func @transform_3(%arg0: i32) -> (i32, i32) {
    %c0_i32 = arith.constant 0 : i32
    %c0_i32_0 = arith.constant 0 : i32
    %c0_i32_1 = arith.constant 0 : i32
    return %c0_i32, %c0_i32_0 : i32, i32
  }
  func.func @transform_4(%arg0: i32) -> (i32, i32) {
    %c0_i32 = arith.constant 0 : i32
    %c0_i32_0 = arith.constant 0 : i32
    %c0_i32_1 = arith.constant 0 : i32
    return %c0_i32, %c0_i32_0 : i32, i32
  }
  func.func @transform_5(%arg0: i32) -> (i32, i32) {
    %c0_i32 = arith.constant 0 : i32
    %c0_i32_0 = arith.constant 0 : i32
    return %arg0, %c0_i32 : i32, i32
  }
}

</mosaic_0001>

<bundles_post_ra>
// kernel: test_model_forward.1
= control target key start
LH: loop header
LB: loop body
LE: loop exit
PB: predicated region body
PF: predicated region fallthrough
CT: control target
= control target key end

     0   :  { %s680_s18 = smov 0   ;;  %s755_s0 = inlined_call_operand.vmem [shape: f32[128,12], index: 0, kind: input, shape index: {}]   ;;  %s756_s1 = inlined_call_operand.vmem [shape: f32[12,8], index: 1, kind: input, shape index: {}]   ;;  %s757_s2 = inlined_call_operand.vmem [shape: f32[1,8], index: 2, kind: input, shape index: {}]   ;;  %s758_s3 = inlined_call_operand.vmem [shape: f32[8,10], index: 3, kind: input, shape index: {}]   ;;  %s759_s4 = inlined_call_operand.vmem [shape: f32[1,10], index: 4, kind: input, shape index: {}]   ;;  %s760_s5 = inlined_call_operand.vmem [shape: f32[128,128], index: 5, kind: output, shape index: {}]  }
   0x1 LB: > { %s571_s19 = sadd.s32 4294967295, %s646_s18   ;;  %p575_p0 = scmp.ge.s32.totalorder %s646_s18, 1  ;;  %s646_s18 = sphi %s680_s18, %s15_s18  }
   0x2   : > { %p188_p1 = scmp.lt.s32.totalorder %s646_s18, 5 }
   0x4   : > { %p189_p2 = pnand %p575_p0, %p188_p1 }
   0x5   : > { %s576_s24 = sshll.u32 (!%p189_p2), %s571_s19, 2  ;;  %s648_s8 = smov (!%p189_p2), 8  }
   0x6   : > { %192 = sbr.rel (%p189_p2) target bundleno = 553 (0x229), region = 40  ;;  %p217_p3 = scmp.lt.s32.totalorder (!%p189_p2), %s576_s24, 15 }
   0x7   : > { %s649_s11 = smov (!%p189_p2), 16  }
   0xb   : > { %v233_v0 = vld [vmem:[%s756_s1 + $0x8] sm:$0xf]  ;;  %vm254_vm0 = vcmask 1043456   ;;  %v232_v1 = vld [vmem:[%s756_s1] sm:$0xff]  ;;  %s762_s24 = smov (!%p217_p3, %s576_s24), 15  ;;  %vm241_vm1 = vcmask 97280  }
   0xc   : > { %604 = vmatprep.subr.msk.mxu0 %vm254_vm0, %v233_v0  ;;  %s577_s25 = sshll.u32 %s762_s24, 3  ;;  %v363_v6 = vld [vmem:[%s758_s3] sm:$0xff]  ;;  %vm371_vm2 = vcmask 64512   ;;  %vm501_vm3 = vcmask 130048   ;;  %vm506_vm4 = vcmask 211968  }
   0xd   : > { %605 = vmatpush3.msk.msra.mxu0 %vm254_vm0, %v233_v0  ;;  %s220_s28 = scalar_lea.vmem %s755_s0, %s577_s25  ;;  %614 = vmatprep.subr.mxu1 %v363_v6  ;;  %v580_v7 = vld [vmem:[%s757_s2] ss:$0 sm:$0xff]  ;;  %s226_s14 = scalar_lea.vmem %s760_s5, %s577_s25 }
   0xe   : > { %606 = vmatprep.subr.mxu0 %v232_v1  ;;  %v228_v2 = vld [vmem:[%s220_s28] sm:$0xff]  ;;  %v229_v3 = vld [vmem:[%s220_s28 + $0x8] sm:$0xff]  ;;  %v230_v4 = vld [vmem:[%s220_s28 + $0x10] sm:$0xff]  ;;  %615 = vmatpush3.msra.mxu1 %v363_v6 }
   0xf   : > { %607 = vmatpush3.msra.mxu0 %v232_v1  ;;  %608 = vmatprep.mubr.msk.f32.mxu0 %vm241_vm1, %v228_v2  ;;  %v231_v5 = vld [vmem:[%s220_s28 + $0x18] sm:$0xff]  ;;  %v586_v36 = vld [vmem:[%s759_s4] ss:$0 sm:$0xff] }
  0x10   : > { %609 = vmatmul.mubr.msk.f32.vlgmr.msra.gmra.mxu0 %vm241_vm1, %v229_v3 }
  0x11   : > { %611 = vmatprep.mubr.msk.f32.mxu0 %vm241_vm1, %v230_v4 }
  0x14   : > { %612 = vmatmul.mubr.msk.f32.gmra.mxu0 %vm241_vm1, %v231_v5 }
  0xd0   : > { %v610_v8 = vpop.f32.mrf.mxu0 }
  0xd1   : > { %v708_v9 = vadd.f32 %v610_v8, %v580_v7 }
  0xd2   : > { %v324_v10 = vpop.f32.mrf.mxu0 }
  0xd3   : > { %v348_v11 = vmul.f32 0.70710677, %v708_v9  ;;  %v711_v12 = vadd.f32 %v580_v7, %v324_v10  ;;  %v344_v21 = vmul.f32 0.5, %v708_v9 }
  0xd4   : > { %v613_v13 = vpop.f32.mrf.mxu0 }
  0xd5   : > { %632 = verf.f32 %v348_v11  ;;  %v347_v14 = vmul.f32 0.70710677, %v711_v12  ;;  %v714_v15 = vadd.f32 %v613_v13, %v580_v7  ;;  %v343_v25 = vmul.f32 0.5, %v711_v12 }
  0xd6   : > { %v334_v16 = vpop.f32.mrf.mxu0 }
  0xd7   : > { %634 = verf.f32 %v347_v14  ;;  %v350_v17 = vmul.f32 0.70710677, %v714_v15  ;;  %v717_v18 = vadd.f32 %v580_v7, %v334_v16  ;;  %v346_v29 = vmul.f32 0.5, %v714_v15 }
  0xd9   : > { %636 = verf.f32 %v350_v17  ;;  %v349_v19 = vmul.f32 0.70710677, %v717_v18  ;;  %v345_v32 = vmul.f32 0.5, %v717_v18 }
  0xdb   : > { %638 = verf.f32 %v349_v19 }
  0xe2   : > { %v633_v20 = vpop.eup %632 }
  0xe3   : > { %v356_v22 = vadd.f32 1.0, %v633_v20 }
  0xe4   : > { %v635_v23 = vpop.eup %634 }
  0xe5   : > { %v360_v24 = vmul.f32 %v356_v22, %v344_v21  ;;  %v355_v26 = vadd.f32 1.0, %v635_v23 }
  0xe6   : > { %v637_v27 = vpop.eup %636 }
  0xe7   : > { %471 = vrot.lane.b32.xlu0 %v360_v24, %s648_s8  ;;  %v359_v28 = vmul.f32 %v355_v26, %v343_v25  ;;  %v358_v30 = vadd.f32 1.0, %v637_v27 }
  0xe8   : > { %v639_v31 = vpop.eup %638 }
  0xe9   : > { %v357_v33 = vadd.f32 1.0, %v639_v31  ;;  %616 = vmatprep.mubr.msk.f32.mxu1 %vm371_vm2, %v359_v28  ;;  %v362_v34 = vmul.f32 %v358_v30, %v346_v29 }
  0xea   : > { %617 = vmatmul.mubr.msk.f32.vlgmr.msra.gmra.mxu1 %vm371_vm2, %v360_v24 }
  0xeb   : > { %v361_v35 = vmul.f32 %v357_v33, %v345_v32  ;;  %475 = vrot.lane.b32.xlu1 %v362_v34, %s648_s8  ;;  %469 = vrot.lane.b32.xlu0 %v359_v28, %s648_s8 }
  0xed   : > { %619 = vmatprep.mubr.msk.f32.mxu1 %vm371_vm2, %v361_v35 }
  0xee   : > { %620 = vmatmul.mubr.msk.f32.gmra.mxu1 %vm371_vm2, %v362_v34 }
  0xef   : > { %473 = vrot.lane.b32.xlu1 %v361_v35, %s648_s8 }
 0x159   : > { %v472_v46 = vpop.permute.xlu0 %471 }
 0x15a   : > { %v498_v49 = vsel %vm371_vm2, %v708_v9, %v472_v46 }
 0x15d   : > { %v476_v45 = vpop.permute.xlu1 %475  ;;  %v470_v48 = vpop.permute.xlu0 %469 }
 0x15e   : > { %v497_v52 = vsel %vm371_vm2, %v711_v12, %v470_v48  ;;  %v500_v56 = vsel %vm371_vm2, %v714_v15, %v476_v45 }
 0x161   : > { %v474_v47 = vpop.permute.xlu1 %473 }
 0x162   : > { %v499_v60 = vsel %vm371_vm2, %v717_v18, %v474_v47 }
 0x1aa   : > { %v618_v37 = vpop.f32.mrf.mxu1 }
 0x1ab   : > { %v456_v38 = vadd.f32 %v618_v37, %v586_v36 }
 0x1ac   : > { %v450_v39 = vpop.f32.mrf.mxu1 }
 0x1ad   : > { %v451_v40 = vadd.f32 %v586_v36, %v450_v39  ;;  %487 = vrot.lane.b32.xlu1 %v456_v38, %s649_s11 }
 0x1ae   : > { %v621_v41 = vpop.f32.mrf.mxu1 }
 0x1af   : > { %v466_v42 = vadd.f32 %v621_v41, %v586_v36  ;;  %485 = vrot.lane.b32.xlu0 %v451_v40, %s649_s11 }
 0x1b0   : > { %v460_v43 = vpop.f32.mrf.mxu1 }
 0x1b1   : > { %v461_v44 = vadd.f32 %v586_v36, %v460_v43  ;;  %491 = vrot.lane.b32.xlu1 %v466_v42, %s649_s11 }
 0x1b3   : > { %489 = vrot.lane.b32.xlu0 %v461_v44, %s649_s11 }
 0x21f   : > { %v488_v50 = vpop.permute.xlu1 %487 }
 0x220   : > { %v503_v51 = vsel %vm501_vm3, %v498_v49, %v488_v50 }
 0x221   : > { %v508_v53 = vsel %vm506_vm4, %v503_v51, 0.0  ;;  %v486_v54 = vpop.permute.xlu0 %485 }
 0x222   : > { %512 = vst [vmem:[%s226_s14 + $0x8] sm:$0xff] %v508_v53  ;;  %v502_v55 = vsel %vm501_vm3, %v497_v52, %v486_v54 }
 0x223   : > { %v507_v57 = vsel %vm506_vm4, %v502_v55, 0.0  ;;  %v492_v58 = vpop.permute.xlu1 %491 }
 0x224   : > { %511 = vst [vmem:[%s226_s14] sm:$0xff] %v507_v57  ;;  %v505_v59 = vsel %vm501_vm3, %v500_v56, %v492_v58 }
 0x225   : > { %v510_v61 = vsel %vm506_vm4, %v505_v59, 0.0  ;;  %v490_v62 = vpop.permute.xlu0 %489 }
 0x226   : > { %514 = vst [vmem:[%s226_s14 + $0x18] sm:$0xff] %v510_v61  ;;  %v504_v63 = vsel %vm501_vm3, %v499_v60, %v490_v62 }
 0x227   : > { %v509_v0 = vsel %vm506_vm4, %v504_v63, 0.0 }
 0x228   : > { %513 = vst [vmem:[%s226_s14 + $0x10] sm:$0xff] %v509_v0 }
 0x229 PF: > { %s15_s18 = sadd.s32 1, %s646_s18  }
 0x22a   : > { %p12_p4 = scmp.ge.s32.totalorder %s15_s18, 6  }
 0x22c   :  { %14 = sbr.rel (!%p12_p4) target bundleno = 1 (0x1), region = 70 }

</bundles_post_ra>
